<compile_context>
chip_gen: v7x
topology: tpu7x:2x2x1
jax: 0.10.0
libtpu: 0.0.40
codegen_flags: <defaults>
</compile_context>

<pallas_src>
import functools

import jax
import jax.numpy as jnp
from jax.experimental import pallas as pl
from jax.experimental.pallas import tpu as pltpu


def _round_up(x: int, m: int) -> int:
    return ((x + m - 1) // m) * m


# ----------------------------------------------------------------------------
# Pallas kernels
# ----------------------------------------------------------------------------
def _mm_kernel(a_ref, b_ref, bias_ref, o_ref, *, relu):
    y = jnp.dot(a_ref[...], b_ref[...], preferred_element_type=jnp.float32)
    y = y + bias_ref[...]
    if relu:
        y = jnp.maximum(y, 0.0)
    o_ref[...] = y.astype(o_ref.dtype)


def _conv_tap_kernel(*refs, tm, cin, offs, relu, has_res):
    if has_res:
        a_ref, h_ref, b_ref, bias_ref, res_ref, o_ref, ext_ref = refs
    else:
        a_ref, h_ref, b_ref, bias_ref, o_ref, ext_ref = refs
        res_ref = None

    # Assemble row tile + halo into one contiguous VMEM buffer so every tap is
    # a static row-shifted slice of it.
    ext_ref[0:tm, :] = a_ref[...]
    ext_ref[tm:, :] = h_ref[...]

    acc = None
    for t, off in enumerate(offs):
        a_t = ext_ref[off:off + tm, :]
        b_t = b_ref[t * cin:(t + 1) * cin, :]
        d = jnp.dot(a_t, b_t, preferred_element_type=jnp.float32)
        acc = d if acc is None else acc + d

    y = acc + bias_ref[...]
    if res_ref is not None:
        y = y + res_ref[...].astype(jnp.float32)
    if relu:
        y = jnp.maximum(y, 0.0)
    o_ref[...] = y.astype(o_ref.dtype)


# ----------------------------------------------------------------------------
# Tile selection helpers
# ----------------------------------------------------------------------------
def _pick_row_tile(m, k):
    """Row tile for the plain matmul path: <= 2048 rows, A block <= ~6 MiB."""
    m8 = _round_up(max(int(m), 8), 8)
    cap = max(8, (((6 << 20) // (int(k) * 4)) // 8) * 8)
    target = max(8, min(2048, cap))
    if m8 <= target:
        return m8, m8
    nb = -(-m8 // target)
    tm = _round_up(-(-m8 // nb), 8)
    return tm, tm * nb


def _pick_conv_tile(m_out, h_r, cin):
    """Row tile for conv_tap: a multiple of the halo size, VMEM-bounded."""
    if cin <= 128:
        target = 2048
    elif cin <= 256:
        target = 1024
    else:
        target = 512
    max_mult = max(1, target // h_r)
    nb = -(-m_out // (max_mult * h_r))
    m_mult = max(1, -(-m_out // (nb * h_r)))
    return m_mult * h_r, m_mult


# ----------------------------------------------------------------------------
# Pallas conv wrappers
# ----------------------------------------------------------------------------
def matmul_bias(A, B, bias, relu=False, out_dtype=jnp.bfloat16):
    """(M,K) @ (K,Cout) + bias (+ReLU) with resident weights, single K step."""
    M, K = A.shape
    _, cout = B.shape
    tm, mp = _pick_row_tile(M, K)
    a = jnp.pad(A.astype(jnp.bfloat16), ((0, mp - M), (0, 0)))
    bmat = B.astype(jnp.bfloat16)
    bvec = bias.astype(jnp.float32).reshape(1, cout)
    out = pl.pallas_call(
        functools.partial(_mm_kernel, relu=relu),
        out_shape=jax.ShapeDtypeStruct((mp, cout), out_dtype),
        grid=(mp // tm,),
        in_specs=[
            pl.BlockSpec((tm, K), lambda i: (i, 0)),
            pl.BlockSpec((K, cout), lambda i: (0, 0)),   # resident weights
            pl.BlockSpec((1, cout), lambda i: (0, 0)),
        ],
        out_specs=pl.BlockSpec((tm, cout), lambda i: (i, 0)),
        compiler_params=pltpu.CompilerParams(
            dimension_semantics=("parallel",)),
    )(a, bmat, bvec)
    return out[:M]


def conv_tap(x, w, bias, residual=None, relu=True, out_dtype=jnp.bfloat16):
    """Stride-1 'same' KxK conv as a tap-streaming Pallas matmul.

    x: (N,H,W,Cin) bf16-ish, w: (K,K,Cin,Cout) with BN scale folded in,
    bias: (Cout,).  residual (N,H,W,Cout) is added before the ReLU.
    """
    N, H, W, C = x.shape
    kh, kw, cin, cout = w.shape
    assert kh == kw and kh % 2 == 1 and cin == C

    p = kh // 2
    Hp, Wp = H + 2 * p, W + 2 * p
    m_out = N * Hp * Wp              # rows of the (padded) output grid
    g = p * Wp + p                   # flat-row guard == max backward shift
    h_r = _round_up(2 * g, 8)        # halo rows appended to every row tile
    tm, m_mult = _pick_conv_tile(m_out, h_r, C)
    mp = _round_up(m_out, tm)
    grid_i = mp // tm

    xw = jnp.pad(x.astype(jnp.bfloat16), ((0, 0), (p, p), (p, p), (0, 0)))
    a = xw.reshape(m_out, C)
    a = jnp.pad(a, ((g, mp + h_r - g - m_out), (0, 0)))      # (mp + h_r, C)

    bmat = w.astype(jnp.bfloat16).reshape(kh * kw * cin, cout)
    bvec = bias.astype(jnp.float32).reshape(1, cout)
    offs = tuple(dh * Wp + dw for dh in range(kh) for dw in range(kw))

    def _halo_map(mult):
        return lambda i: (i * mult + mult, 0)

    in_specs = [
        pl.BlockSpec((tm, C), lambda i: (i, 0)),               # row tile
        pl.BlockSpec((h_r, C), _halo_map(m_mult)),             # halo tile
        pl.BlockSpec((kh * kw * cin, cout), lambda i: (0, 0)),  # resident W
        pl.BlockSpec((1, cout), lambda i: (0, 0)),             # bias
    ]
    args = [a, a, bmat, bvec]
    if residual is not None:
        r = jnp.pad(residual.astype(jnp.bfloat16),
                    ((0, 0), (p, p), (p, p), (0, 0))).reshape(m_out, cout)
        r = jnp.pad(r, ((0, mp - m_out), (0, 0)))
        in_specs.append(pl.BlockSpec((tm, cout), lambda i: (i, 0)))
        args.append(r)

    kern = functools.partial(_conv_tap_kernel, tm=tm, cin=cin, offs=offs,
                             relu=relu, has_res=residual is not None)
    out = pl.pallas_call(
        kern,
        out_shape=jax.ShapeDtypeStruct((mp, cout), out_dtype),
        grid=(grid_i,),
        in_specs=in_specs,
        out_specs=pl.BlockSpec((tm, cout), lambda i: (i, 0)),
        scratch_shapes=[pltpu.VMEM((tm + h_r, C), jnp.bfloat16)],
        compiler_params=pltpu.CompilerParams(
            dimension_semantics=("parallel",)),
    )(*args)

    out = out[:m_out].reshape(N, Hp, Wp, cout)[:, p:p + H, p:p + W, :]
    return out


def conv1x1(x, w, bias, stride=1, relu=True):
    """1x1 conv (optionally strided) as a single Pallas matmul."""
    if stride != 1:
        x = x[:, ::stride, ::stride, :]
    N, H, W, C = x.shape
    cout = w.shape[-1]
    out = matmul_bias(x.reshape(N * H * W, C), w.reshape(C, cout), bias,
                      relu=relu)
    return out.reshape(N, H, W, cout)


def _im2col(x, kh, kw, stride, pad):
    """x:(N,H,W,C) -> (N*Ho*Wo, kh*kw*C) bf16 patches, ordering (dh, dw, cin)."""
    # TODO(synk): only used for the small strided encoder convs; stride-1
    # convs go through conv_tap (no im2col materialisation).
    N, H, W, C = x.shape
    Ho = (H + 2 * pad - kh) // stride + 1
    Wo = (W + 2 * pad - kw) // stride + 1
    xp = jnp.pad(x, ((0, 0), (pad, pad), (pad, pad), (0, 0)))
    cols = []
    for dh in range(kh):
        for dw in range(kw):
            cols.append(xp[:,
                           dh:dh + stride * (Ho - 1) + 1:stride,
                           dw:dw + stride * (Wo - 1) + 1:stride, :])
    patches = jnp.concatenate(cols, axis=-1).astype(jnp.bfloat16)
    return patches.reshape(N * Ho * Wo, kh * kw * C), (N, Ho, Wo)


def conv_im2col(x, w, bias, stride, pad, relu=True):
    kh, kw, cin, cout = w.shape
    A, (N, Ho, Wo) = _im2col(x, kh, kw, stride, pad)
    out = matmul_bias(A, w.reshape(kh * kw * cin, cout), bias, relu=relu)
    return out.reshape(N, Ho, Wo, cout)


# ----------------------------------------------------------------------------
# XLA glue: max-pool, resizes
# ----------------------------------------------------------------------------
def maxpool3x3_s2(x):
    """MaxPool2d(kernel=3, stride=2, padding=1) on NHWC (separable pairwise max)."""
    N, H, W, C = x.shape
    Ho = (H + 2 - 3) // 2 + 1
    Wo = (W + 2 - 3) // 2 + 1
    xp = jnp.pad(x, ((0, 0), (1, 1), (1, 1), (0, 0)),
                 constant_values=float("-inf"))
    cm = jnp.maximum(
        jnp.maximum(xp[:, :, 0:2 * Wo - 1:2, :], xp[:, :, 1:2 * Wo:2, :]),
        xp[:, :, 2:2 * Wo + 1:2, :])
    out = jnp.maximum(
        jnp.maximum(cm[:, 0:2 * Ho - 1:2], cm[:, 1:2 * Ho:2]),
        cm[:, 2:2 * Ho + 1:2])
    return out


def area_downsample(x, out_hw):
    """F.interpolate(mode='area') for exact integer factors (average pool)."""
    # TODO(synk): non-integer 'area' factors (adaptive avg-pool) not implemented.
    N, H, W, C = x.shape
    oh, ow = out_hw
    assert H % oh == 0 and W % ow == 0
    fh, fw = H // oh, W // ow
    return x.reshape(N, oh, fh, ow, fw, C).mean(axis=(2, 4))


def _linear_resize_matrix(n_in, n_out):
    """Bilinear, align_corners=True, 1-D interpolation matrix (n_out, n_in)."""
    if n_in == 1:
        return jnp.ones((n_out, 1), jnp.float32)
    o = jnp.arange(n_out, dtype=jnp.float32)
    src = o * (n_in - 1) / max(n_out - 1, 1)
    lo = jnp.clip(jnp.floor(src).astype(jnp.int32), 0, n_in - 2)
    t = src - lo.astype(jnp.float32)
    rows = jnp.arange(n_out, dtype=jnp.int32)
    M = jnp.zeros((n_out, n_in), jnp.float32)
    M = M.at[rows, lo].add(1.0 - t)
    M = M.at[rows, lo + 1].add(t)
    return M


def _cubic_resize_matrix(n_in, n_out):
    """Bicubic (a=-0.75), align_corners=True, 1-D matrix (n_out, n_in)."""
    if n_in == 1:
        return jnp.ones((n_out, 1), jnp.float32)
    A = -0.75
    o = jnp.arange(n_out, dtype=jnp.float32)
    src = o * (n_in - 1) / max(n_out - 1, 1)
    f = jnp.floor(src)
    t = src - f

    def w_outer(s):   # 1 <= s <= 2
        return ((A * s - 5 * A) * s + 8 * A) * s - 4 * A

    def w_inner(s):   # 0 <= s <= 1
        return ((A + 2) * s - (A + 3)) * s * s + 1

    w0 = w_outer(t + 1.0)
    w1 = w_inner(t)
    w2 = w_inner(1.0 - t)
    w3 = 1.0 - w0 - w1 - w2
    idx = jnp.clip(jnp.stack([f - 1, f, f + 1, f + 2], axis=1).astype(jnp.int32),
                   0, n_in - 1)
    wts = jnp.stack([w0, w1, w2, w3], axis=1)
    rows = jnp.broadcast_to(jnp.arange(n_out, dtype=jnp.int32)[:, None],
                            idx.shape)
    M = jnp.zeros((n_out, n_in), jnp.float32)
    M = M.at[rows, idx].add(wts)
    return M


def _separable_resize(x, Mh, Mw, dtype):
    # TODO(synk): resizes kept as plain-JAX separable matmuls (XLA glue).
    y = jnp.einsum("oh,nhwc->nowc", Mh.astype(dtype), x.astype(dtype))
    y = jnp.einsum("ow,nhwc->nhoc", Mw.astype(dtype), y)
    return y


def bilinear_upsample(x, scale):
    N, H, W, C = x.shape
    Mh = _linear_resize_matrix(H, H * scale)
    Mw = _linear_resize_matrix(W, W * scale)
    return _separable_resize(x, Mh, Mw, jnp.bfloat16)


def bicubic_resize(x, out_hw):
    N, H, W, C = x.shape
    Mh = _cubic_resize_matrix(H, out_hw[0])
    Mw = _cubic_resize_matrix(W, out_hw[1])
    return _separable_resize(x, Mh, Mw, jnp.float32)


# ----------------------------------------------------------------------------
# Deterministic parameter construction (BN scale folded into weights)
# ----------------------------------------------------------------------------
def make_conv_bn_params(key, kh, kw, cin, cout):
    k1, k2, k3, k4, k5 = jax.random.split(key, 5)
    fan_in = kh * kw * cin
    w = jax.random.normal(k1, (kh, kw, cin, cout), jnp.float32) / jnp.sqrt(fan_in)
    gamma = 1.0 + 0.1 * jax.random.normal(k2, (cout,), jnp.float32)
    beta = 0.1 * jax.random.normal(k3, (cout,), jnp.float32)
    mean = 0.1 * jax.random.normal(k4, (cout,), jnp.float32)
    var = 1.0 + 0.1 * jnp.abs(jax.random.normal(k5, (cout,), jnp.float32))
    scale = gamma / jnp.sqrt(var + 1e-5)   # inference-mode BN (running stats)
    return {"w": (w * scale).astype(jnp.bfloat16),
            "bias": beta - mean * scale}


def make_conv_params(key, kh, kw, cin, cout):
    k1, k2 = jax.random.split(key)
    fan_in = kh * kw * cin
    w = jax.random.normal(k1, (kh, kw, cin, cout), jnp.float32) / jnp.sqrt(fan_in)
    b = 0.1 * jax.random.normal(k2, (cout,), jnp.float32)
    return {"w": w.astype(jnp.bfloat16), "bias": b}


def make_up_projection_params(key, cin, cout, ksize=3):
    k = jax.random.split(key, 4)
    return {"conv0": make_conv_bn_params(k[0], 1, 1, cin, cout),
            "conv1": make_conv_bn_params(k[1], ksize, ksize, cout, cout),
            "conv1_2": make_conv_bn_params(k[2], ksize, ksize, cout, cout),
            "conv2": make_conv_bn_params(k[3], ksize, ksize, cout, cout)}


# ResNet-34 body config: (out_channels, first-block stride, num_blocks).
# Kept as a static Python constant (NOT inside params) so strides stay static
# ints under jit.
_RESNET34_LAYERS = ((64, 1, 3), (128, 2, 4), (256, 2, 6), (512, 2, 3))


def make_encoder_params(key):
    keys = iter(jax.random.split(key, 64))
    p = {"stem": make_conv_bn_params(next(keys), 7, 7, 3, 64)}
    layers = []
    cin = 64
    for cout, stride, nb in _RESNET34_LAYERS:
        blocks = []
        for b in range(nb):
            s = stride if b == 0 else 1
            bin_c = cin if b == 0 else cout
            blk = {"conv1": make_conv_bn_params(next(keys), 3, 3, bin_c, cout),
                   "conv2": make_conv_bn_params(next(keys), 3, 3, cout, cout)}
            if s != 1 or bin_c != cout:
                blk["down"] = make_conv_bn_params(next(keys), 1, 1, bin_c, cout)
            blocks.append(blk)
        layers.append(blocks)
        cin = cout
    p["layers"] = layers
    return p


def make_decoder_params(key, bc):
    k = jax.random.split(key, 4)
    return {"up1": make_up_projection_params(k[0], bc[3], bc[2]),
            "up2": make_up_projection_params(k[1], bc[2], bc[1]),
            "up3": make_up_projection_params(k[2], bc[1], bc[0]),
            "up4": make_up_projection_params(k[3], bc[0], bc[0])}


def make_mff_params(key, bc, num_features=64):
    k = jax.random.split(key, 5)
    nf4 = num_features // 4
    return {"up1": make_up_projection_params(k[0], bc[0], nf4),
            "up2": make_up_projection_params(k[1], bc[1], nf4),
            "up3": make_up_projection_params(k[2], bc[2], nf4),
            "up4": make_up_projection_params(k[3], bc[3], nf4),
            "conv1": make_conv_bn_params(k[4], 5, 5, num_features, num_features)}


def make_refinement_params(key, bc):
    k = jax.random.split(key, 3)
    nf = 64 + bc[0]
    return {"conv0": make_conv_bn_params(k[0], 3, 3, nf, nf),
            "conv1": make_conv_bn_params(k[1], 3, 3, nf, nf),
            "conv2": make_conv_params(k[2], 3, 3, nf, 1)}


def make_params(key):
    k = jax.random.split(key, 4)
    bc = [64, 128, 256, 512]
    return {"encoder": make_encoder_params(k[0]),
            "decoder": make_decoder_params(k[1], bc),
            "mff": make_mff_params(k[2], bc),
            "refinement": make_refinement_params(k[3], bc)}


# ----------------------------------------------------------------------------
# Forward passes (NHWC internally)
# ----------------------------------------------------------------------------
def encoder_forward(p, x):
    x = conv_im2col(x, p["stem"]["w"], p["stem"]["bias"], stride=2, pad=3,
                    relu=True)
    x = maxpool3x3_s2(x)
    feats = []
    for (cout, stride, nb), blocks in zip(_RESNET34_LAYERS, p["layers"]):
        for b, blk in enumerate(blocks):
            s = stride if b == 0 else 1
            identity = x
            if s == 1:
                out = conv_tap(x, blk["conv1"]["w"], blk["conv1"]["bias"],
                               relu=True)
            else:
                out = conv_im2col(x, blk["conv1"]["w"], blk["conv1"]["bias"],
                                  stride=s, pad=1, relu=True)
            if "down" in blk:
                identity = conv1x1(x, blk["down"]["w"], blk["down"]["bias"],
                                   stride=s, relu=False)
            # conv2 + BN + residual-add + ReLU fused into one Pallas epilogue.
            x = conv_tap(out, blk["conv2"]["w"], blk["conv2"]["bias"],
                         relu=True, residual=identity)
        feats.append(x)
    return feats


def up_projection_forward(p, x, scale):
    x = conv1x1(x, p["conv0"]["w"], p["conv0"]["bias"], relu=True)
    x = bilinear_upsample(x, scale)
    xc1 = conv_tap(x, p["conv1"]["w"], p["conv1"]["bias"], relu=True)
    bran2 = conv_tap(x, p["conv2"]["w"], p["conv2"]["bias"], relu=False)
    # relu(bn1_2(conv1_2(xc1)) + bran2) fused into conv1_2's epilogue.
    return conv_tap(xc1, p["conv1_2"]["w"], p["conv1_2"]["bias"],
                    relu=True, residual=bran2)


def decoder_forward(p, block4):
    x = up_projection_forward(p["up1"], block4, 2)
    x = up_projection_forward(p["up2"], x, 2)
    x = up_projection_forward(p["up3"], x, 2)
    x = up_projection_forward(p["up4"], x, 4)
    return x


def _block_diag_conv_w(ws):
    kh, kw, ci, co = ws[0].shape
    n = len(ws)
    out = jnp.zeros((kh, kw, n * ci, n * co), ws[0].dtype)
    for b, w in enumerate(ws):
        out = out.at[:, :, b * ci:(b + 1) * ci, b * co:(b + 1) * co].set(w)
    return out


def mff_forward(p, b1, b2, b3, b4):
    ups = [p["up1"], p["up2"], p["up3"], p["up4"]]
    feats = [b1, b2, b3, b4]
    scales = [4, 8, 16, 32]
    branches = []
    for q, f, s in zip(ups, feats, scales):
        y = conv1x1(f, q["conv0"]["w"], q["conv0"]["bias"], relu=True)
        branches.append(bilinear_upsample(y, s))
    x = jnp.concatenate(branches, axis=-1)        # (N, H, W, 64)

    # Fuse the four 16-ch UpProjection tails into single 64-ch block-diagonal
    # convolutions (identical to running them separately + concatenating).
    w1 = _block_diag_conv_w([q["conv1"]["w"] for q in ups])
    bb1 = jnp.concatenate([q["conv1"]["bias"] for q in ups])
    w12 = _block_diag_conv_w([q["conv1_2"]["w"] for q in ups])
    bb12 = jnp.concatenate([q["conv1_2"]["bias"] for q in ups])
    w2 = _block_diag_conv_w([q["conv2"]["w"] for q in ups])
    bb2 = jnp.concatenate([q["conv2"]["bias"] for q in ups])

    xc1 = conv_tap(x, w1, bb1, relu=True)
    bran2 = conv_tap(x, w2, bb2, relu=False)
    merged = conv_tap(xc1, w12, bb12, relu=True, residual=bran2)
    return conv_tap(merged, p["conv1"]["w"], p["conv1"]["bias"], relu=True)


def refinement_forward(p, dec, mff):
    x = jnp.concatenate([dec, mff], axis=-1)
    x = conv_tap(x, p["conv0"]["w"], p["conv0"]["bias"], relu=True)
    x = conv_tap(x, p["conv1"]["w"], p["conv1"]["bias"], relu=True)
    # Cout=1: no channel padding, only useful bytes are written (f32).
    return conv_tap(x, p["conv2"]["w"], p["conv2"]["bias"], relu=False,
                    out_dtype=jnp.float32)


def hu34_forward(params, x_nchw, size):
    """x_nchw: (N, 3, H, W) float32 -> depth map (N, 1, H, W) float32."""
    N, C, H, W = x_nchw.shape
    x = jnp.transpose(x_nchw, (0, 2, 3, 1)).astype(jnp.float32)
    x = area_downsample(x, size).astype(jnp.bfloat16)

    b1, b2, b3, b4 = encoder_forward(params["encoder"], x)
    dec = decoder_forward(params["decoder"], b4)
    mff = mff_forward(params["mff"], b1, b2, b3, b4)
    out = refinement_forward(params["refinement"], dec, mff)   # NHWC, 1ch, f32
    out = bicubic_resize(out, (H, W))          # align_corners=True (TODO(synk))
    return jnp.transpose(out, (0, 3, 1, 2))


if __name__ == "__main__":
    key = jax.random.PRNGKey(0)
    pkey, xkey, ckey = jax.random.split(key, 3)

    # --- quick numerical self-check of the tap-streaming conv kernel --------
    def _conv_ref(x, w, bias, residual=None, relu=True):
        kh, kw, ci, co = w.shape
        pp = kh // 2
        n, h, wd, c = x.shape
        xp = jnp.pad(x.astype(jnp.float32),
                     ((0, 0), (pp, pp), (pp, pp), (0, 0)))
        out = jnp.zeros((n, h, wd, co), jnp.float32)
        for dh in range(kh):
            for dw in range(kw):
                out = out + jnp.einsum(
                    "nhwc,co->nhwo", xp[:, dh:dh + h, dw:dw + wd, :],
                    w[dh, dw].astype(jnp.float32))
        out = out + bias.astype(jnp.float32)
        if residual is not None:
            out = out + residual.astype(jnp.float32)
        if relu:
            out = jnp.maximum(out, 0.0)
        return out

    kx, kw_, kb, kr = jax.random.split(ckey, 4)
    xt = jax.random.normal(kx, (1, 6, 10, 64), jnp.float32).astype(jnp.bfloat16)
    wt = (jax.random.normal(kw_, (3, 3, 64, 64), jnp.float32) / 24.0
          ).astype(jnp.bfloat16)
    bt = 0.1 * jax.random.normal(kb, (64,), jnp.float32)
    rt = jax.random.normal(kr, (1, 6, 10, 64), jnp.float32).astype(jnp.bfloat16)
    got = conv_tap(xt, wt, bt, residual=rt, relu=True)
    want = _conv_ref(xt, wt, bt, residual=rt, relu=True)
    err = float(jnp.max(jnp.abs(got.astype(jnp.float32) - want)))
    assert err < 0.1, f"conv_tap mismatch, max abs err = {err}"

    # --- full model ----------------------------------------------------------
    params = make_params(pkey)

    # Small stand-in for the default size=(192, 256): internal size 32x32,
    # input (N, 3, 64, 64) so the 'area' downsample is an exact 2x2 average.
    size = (32, 32)
    x = jax.random.normal(xkey, (2, 3, 64, 64), jnp.float32)

    fwd = jax.jit(functools.partial(hu34_forward, size=size))
    out = jax.block_until_ready(fwd(params, x))

    assert out.shape == (2, 1, 64, 64), out.shape
    assert bool(jnp.isfinite(out).all())
    print("KERNEL_OK")
</pallas_src>

<mosaic_0001>
module attributes {stable_mosaic.version = 11 : i64} {
  func.func @_conv_tap_kernel(%arg0: i32, %arg1: memref<96x64xbf16, #tpu.memory_space<vmem>>, %arg2: memref<32x64xbf16, #tpu.memory_space<vmem>>, %arg3: memref<576x64xbf16, #tpu.memory_space<vmem>>, %arg4: memref<1x64xf32, #tpu.memory_space<vmem>>, %arg5: memref<96x64xbf16, #tpu.memory_space<vmem>>, %arg6: memref<96x64xbf16, #tpu.memory_space<vmem>>, %arg7: memref<128x64xbf16, #tpu.memory_space<vmem>>) attributes {dimension_semantics = [#tpu.dimension_semantics<parallel>], iteration_bounds = array<i64: 1>, scalar_prefetch = 0 : i64, scratch_operands = 1 : i64, tpu.core_type = #tpu.core_type<tc>, window_params = [{transform_indices = @transform_0, window_bounds = array<i64: 96, 64>}, {transform_indices = @transform_1, window_bounds = array<i64: 32, 64>}, {pipeline_mode = #tpu.pipeline_mode<synchronous>, transform_indices = @transform_2, window_bounds = array<i64: 576, 64>}, {pipeline_mode = #tpu.pipeline_mode<synchronous>, transform_indices = @transform_3, window_bounds = array<i64: 1, 64>}, {transform_indices = @transform_4, window_bounds = array<i64: 96, 64>}, {transform_indices = @transform_5, window_bounds = array<i64: 96, 64>}]} {
    %c0 = arith.constant 0 : index
    %c0_0 = arith.constant 0 : index
    %0 = vector.load %arg1[%c0, %c0_0] : memref<96x64xbf16, #tpu.memory_space<vmem>>, vector<96x64xbf16>
    %c0_1 = arith.constant 0 : index
    %c0_2 = arith.constant 0 : index
    %1 = vector.load %arg7[%c0_1, %c0_2] : memref<128x64xbf16, #tpu.memory_space<vmem>>, vector<96x64xbf16>
    tpu.vector_store %arg7[%c0_1, %c0_2], %0 {strides = array<i32>} : memref<128x64xbf16, #tpu.memory_space<vmem>>, vector<96x64xbf16>,
    %c0_3 = arith.constant 0 : index
    %c0_4 = arith.constant 0 : index
    %2 = vector.load %arg2[%c0_3, %c0_4] : memref<32x64xbf16, #tpu.memory_space<vmem>>, vector<32x64xbf16>
    %c96 = arith.constant 96 : index
    %c0_5 = arith.constant 0 : index
    %3 = vector.load %arg7[%c96, %c0_5] : memref<128x64xbf16, #tpu.memory_space<vmem>>, vector<32x64xbf16>
    tpu.vector_store %arg7[%c96, %c0_5], %2 {strides = array<i32>} : memref<128x64xbf16, #tpu.memory_space<vmem>>, vector<32x64xbf16>,
    %c0_6 = arith.constant 0 : index
    %c0_7 = arith.constant 0 : index
    %4 = vector.load %arg7[%c0_6, %c0_7] : memref<128x64xbf16, #tpu.memory_space<vmem>>, vector<96x64xbf16>
    %c0_8 = arith.constant 0 : index
    %c0_9 = arith.constant 0 : index
    %5 = vector.load %arg3[%c0_8, %c0_9] : memref<576x64xbf16, #tpu.memory_space<vmem>>, vector<64x64xbf16>
    %cst = arith.constant dense<0.000000e+00> : vector<96x64xf32>
    %6 = tpu.matmul %4, %5, %cst {dimension_numbers = #tpu.dot_dimension_numbers<[1], [0], [0], [1], [0, 0, 1, 1], [], []>} : vector<96x64xbf16>, vector<64x64xbf16>, vector<96x64xf32> -> vector<96x64xf32>
    %c1 = arith.constant 1 : index
    %c0_10 = arith.constant 0 : index
    %7 = vector.load %arg7[%c1, %c0_10] : memref<128x64xbf16, #tpu.memory_space<vmem>>, vector<96x64xbf16>
    %c64 = arith.constant 64 : index
    %c0_11 = arith.constant 0 : index
    %8 = vector.load %arg3[%c64, %c0_11] : memref<576x64xbf16, #tpu.memory_space<vmem>>, vector<64x64xbf16>
    %cst_12 = arith.constant dense<0.000000e+00> : vector<96x64xf32>
    %9 = tpu.matmul %7, %8, %cst_12 {dimension_numbers = #tpu.dot_dimension_numbers<[1], [0], [0], [1], [0, 0, 1, 1], [], []>} : vector<96x64xbf16>, vector<64x64xbf16>, vector<96x64xf32> -> vector<96x64xf32>
    %10 = arith.addf %6, %9 : vector<96x64xf32>
    %c2 = arith.constant 2 : index
    %c0_13 = arith.constant 0 : index
    %11 = vector.load %arg7[%c2, %c0_13] : memref<128x64xbf16, #tpu.memory_space<vmem>>, vector<96x64xbf16>
    %c128 = arith.constant 128 : index
    %c0_14 = arith.constant 0 : index
    %12 = vector.load %arg3[%c128, %c0_14] : memref<576x64xbf16, #tpu.memory_space<vmem>>, vector<64x64xbf16>
    %cst_15 = arith.constant dense<0.000000e+00> : vector<96x64xf32>
    %13 = tpu.matmul %11, %12, %cst_15 {dimension_numbers = #tpu.dot_dimension_numbers<[1], [0], [0], [1], [0, 0, 1, 1], [], []>} : vector<96x64xbf16>, vector<64x64xbf16>, vector<96x64xf32> -> vector<96x64xf32>
    %14 = arith.addf %10, %13 : vector<96x64xf32>
    %c12 = arith.constant 12 : index
    %c0_16 = arith.constant 0 : index
    %15 = vector.load %arg7[%c12, %c0_16] : memref<128x64xbf16, #tpu.memory_space<vmem>>, vector<96x64xbf16>
    %c192 = arith.constant 192 : index
    %c0_17 = arith.constant 0 : index
    %16 = vector.load %arg3[%c192, %c0_17] : memref<576x64xbf16, #tpu.memory_space<vmem>>, vector<64x64xbf16>
    %cst_18 = arith.constant dense<0.000000e+00> : vector<96x64xf32>
    %17 = tpu.matmul %15, %16, %cst_18 {dimension_numbers = #tpu.dot_dimension_numbers<[1], [0], [0], [1], [0, 0, 1, 1], [], []>} : vector<96x64xbf16>, vector<64x64xbf16>, vector<96x64xf32> -> vector<96x64xf32>
    %18 = arith.addf %14, %17 : vector<96x64xf32>
    %c13 = arith.constant 13 : index
    %c0_19 = arith.constant 0 : index
    %19 = vector.load %arg7[%c13, %c0_19] : memref<128x64xbf16, #tpu.memory_space<vmem>>, vector<96x64xbf16>
    %c256 = arith.constant 256 : index
    %c0_20 = arith.constant 0 : index
    %20 = vector.load %arg3[%c256, %c0_20] : memref<576x64xbf16, #tpu.memory_space<vmem>>, vector<64x64xbf16>
    %cst_21 = arith.constant dense<0.000000e+00> : vector<96x64xf32>
    %21 = tpu.matmul %19, %20, %cst_21 {dimension_numbers = #tpu.dot_dimension_numbers<[1], [0], [0], [1], [0, 0, 1, 1], [], []>} : vector<96x64xbf16>, vector<64x64xbf16>, vector<96x64xf32> -> vector<96x64xf32>
    %22 = arith.addf %18, %21 : vector<96x64xf32>
    %c14 = arith.constant 14 : index
    %c0_22 = arith.constant 0 : index
    %23 = vector.load %arg7[%c14, %c0_22] : memref<128x64xbf16, #tpu.memory_space<vmem>>, vector<96x64xbf16>
    %c320 = arith.constant 320 : index
    %c0_23 = arith.constant 0 : index
    %24 = vector.load %arg3[%c320, %c0_23] : memref<576x64xbf16, #tpu.memory_space<vmem>>, vector<64x64xbf16>
    %cst_24 = arith.constant dense<0.000000e+00> : vector<96x64xf32>
    %25 = tpu.matmul %23, %24, %cst_24 {dimension_numbers = #tpu.dot_dimension_numbers<[1], [0], [0], [1], [0, 0, 1, 1], [], []>} : vector<96x64xbf16>, vector<64x64xbf16>, vector<96x64xf32> -> vector<96x64xf32>
    %26 = arith.addf %22, %25 : vector<96x64xf32>
    %c24 = arith.constant 24 : index
    %c0_25 = arith.constant 0 : index
    %27 = vector.load %arg7[%c24, %c0_25] : memref<128x64xbf16, #tpu.memory_space<vmem>>, vector<96x64xbf16>
    %c384 = arith.constant 384 : index
    %c0_26 = arith.constant 0 : index
    %28 = vector.load %arg3[%c384, %c0_26] : memref<576x64xbf16, #tpu.memory_space<vmem>>, vector<64x64xbf16>
    %cst_27 = arith.constant dense<0.000000e+00> : vector<96x64xf32>
    %29 = tpu.matmul %27, %28, %cst_27 {dimension_numbers = #tpu.dot_dimension_numbers<[1], [0], [0], [1], [0, 0, 1, 1], [], []>} : vector<96x64xbf16>, vector<64x64xbf16>, vector<96x64xf32> -> vector<96x64xf32>
    %30 = arith.addf %26, %29 : vector<96x64xf32>
    %c25 = arith.constant 25 : index
    %c0_28 = arith.constant 0 : index
    %31 = vector.load %arg7[%c25, %c0_28] : memref<128x64xbf16, #tpu.memory_space<vmem>>, vector<96x64xbf16>
    %c448 = arith.constant 448 : index
    %c0_29 = arith.constant 0 : index
    %32 = vector.load %arg3[%c448, %c0_29] : memref<576x64xbf16, #tpu.memory_space<vmem>>, vector<64x64xbf16>
    %cst_30 = arith.constant dense<0.000000e+00> : vector<96x64xf32>
    %33 = tpu.matmul %31, %32, %cst_30 {dimension_numbers = #tpu.dot_dimension_numbers<[1], [0], [0], [1], [0, 0, 1, 1], [], []>} : vector<96x64xbf16>, vector<64x64xbf16>, vector<96x64xf32> -> vector<96x64xf32>
    %34 = arith.addf %30, %33 : vector<96x64xf32>
    %c26 = arith.constant 26 : index
    %c0_31 = arith.constant 0 : index
    %35 = vector.load %arg7[%c26, %c0_31] : memref<128x64xbf16, #tpu.memory_space<vmem>>, vector<96x64xbf16>
    %c512 = arith.constant 512 : index
    %c0_32 = arith.constant 0 : index
    %36 = vector.load %arg3[%c512, %c0_32] : memref<576x64xbf16, #tpu.memory_space<vmem>>, vector<64x64xbf16>
    %cst_33 = arith.constant dense<0.000000e+00> : vector<96x64xf32>
    %37 = tpu.matmul %35, %36, %cst_33 {dimension_numbers = #tpu.dot_dimension_numbers<[1], [0], [0], [1], [0, 0, 1, 1], [], []>} : vector<96x64xbf16>, vector<64x64xbf16>, vector<96x64xf32> -> vector<96x64xf32>
    %38 = arith.addf %34, %37 : vector<96x64xf32>
    %c0_34 = arith.constant 0 : index
    %c0_35 = arith.constant 0 : index
    %39 = vector.load %arg4[%c0_34, %c0_35] : memref<1x64xf32, #tpu.memory_space<vmem>>, vector<1x64xf32>
    %40 = vector.broadcast %39 : vector<1x64xf32> to vector<96x64xf32>
    %41 = arith.addf %38, %40 : vector<96x64xf32>
    %c0_36 = arith.constant 0 : index
    %c0_37 = arith.constant 0 : index
    %42 = vector.load %arg5[%c0_36, %c0_37] : memref<96x64xbf16, #tpu.memory_space<vmem>>, vector<96x64xbf16>
    %43 = arith.extf %42 : vector<96x64xbf16> to vector<96x64xf32>
    %44 = arith.addf %41, %43 : vector<96x64xf32>
    %cst_38 = arith.constant 0.000000e+00 : f32
    %45 = vector.broadcast %cst_38 : f32 to vector<96x64xf32>
    %46 = arith.maximumf %44, %45 : vector<96x64xf32>
    %47 = arith.truncf %46 : vector<96x64xf32> to vector<96x64xbf16>
    %c0_39 = arith.constant 0 : index
    %c0_40 = arith.constant 0 : index
    %48 = vector.load %arg6[%c0_39, %c0_40] : memref<96x64xbf16, #tpu.memory_space<vmem>>, vector<96x64xbf16>
    tpu.vector_store %arg6[%c0_39, %c0_40], %47 {strides = array<i32>} : memref<96x64xbf16, #tpu.memory_space<vmem>>, vector<96x64xbf16>,
    return
  }
  func.func @transform_0(%arg0: i32) -> (i32, i32) {
    %c0_i32 = arith.constant 0 : i32
    %c0_i32_0 = arith.constant 0 : i32
    return %arg0, %c0_i32 : i32, i32
  }
  func.func @transform_1(%arg0: i32) -> (i32, i32) {
    %c3_i32 = arith.constant 3 : i32
    %0 = arith.muli %arg0, %c3_i32 : i32
    %c3_i32_0 = arith.constant 3 : i32
    %1 = arith.addi %0, %c3_i32_0 : i32
    %c0_i32 = arith.constant 0 : i32
    %c0_i32_1 = arith.constant 0 : i32
    return %1, %c0_i32 : i32, i32
  }
  func.func @transform_2(%arg0: i32) -> (i32, i32) {
    %c0_i32 = arith.constant 0 : i32
    %c0_i32_0 = arith.constant 0 : i32
    %c0_i32_1 = arith.constant 0 : i32
    return %c0_i32, %c0_i32_0 : i32, i32
  }
  func.func @transform_3(%arg0: i32) -> (i32, i32) {
    %c0_i32 = arith.constant 0 : i32
    %c0_i32_0 = arith.constant 0 : i32
    %c0_i32_1 = arith.constant 0 : i32
    return %c0_i32, %c0_i32_0 : i32, i32
  }
  func.func @transform_4(%arg0: i32) -> (i32, i32) {
    %c0_i32 = arith.constant 0 : i32
    %c0_i32_0 = arith.constant 0 : i32
    return %arg0, %c0_i32 : i32, i32
  }
  func.func @transform_5(%arg0: i32) -> (i32, i32) {
    %c0_i32 = arith.constant 0 : i32
    %c0_i32_0 = arith.constant 0 : i32
    return %arg0, %c0_i32 : i32, i32
  }
}

</mosaic_0001>

<bundles_post_ra>
// kernel: tpu_custom_call.1
= control target key start
LH: loop header
LB: loop body
LE: loop exit
PB: predicated region body
PF: predicated region fallthrough
CT: control target
= control target key end

     0   :  { %vm96_vm0 = vcmask 523264   ;;  %vm144_vm1 = vsmask.f32 7424  ;;  %vm772_vm2 = vsmask.f32 1280  ;;  %vm956_vm3 = vcmask 1040384   ;;  %s2901_s2 = inlined_call_operand.vmem [shape: bf16[576,64], index: 2, kind: input, shape index: {}]   ;;  %s2902_s0 = inlined_call_operand.vmem [shape: bf16[128,64], index: 0, kind: input, shape index: {}]   ;;  %s2903_s1 = inlined_call_operand.vmem [shape: bf16[128,64], index: 1, kind: input, shape index: {}]   ;;  %s2904_s4 = inlined_call_operand.vmem [shape: bf16[96,64], index: 4, kind: input, shape index: {}]   ;;  %s2905_s3 = inlined_call_operand.vmem [shape: f32[1,64], index: 3, kind: input, shape index: {}]   ;;  %s2906_s5 = inlined_call_operand.vmem [shape: bf16[96,64], index: 5, kind: output, shape index: {}]  }
   0x1   :  { %v2311_v0 = vld [vmem:[%s2901_s2 + $0x20] sm:$0xff]   ;;  %v2313_v2 = vld [vmem:[%s2901_s2 + $0x28] sm:$0xff]   ;;  %v2315_v4 = vld [vmem:[%s2901_s2 + $0x30] sm:$0xff]   ;;  %vm614_vm4 = vcmask 1041408   ;;  %vm1127_vm5 = vcmask 1043456   ;;  %vm1494_vm6 = vcmask 1042432  }
   0x2   :  { %v2391_v1 = vld [vmem:[%s2901_s2 + $0x80] sm:$0xff]   ;;  %2027 = vmatprep.subr.bf16.mxu1 %v2311_v0  ;;  %v2400_v3 = vld [vmem:[%s2901_s2 + $0x88] sm:$0xff]   ;;  %v2410_v5 = vld [vmem:[%s2901_s2 + $0x90] sm:$0xff]   ;;  %vm453_vm7 = vcmask 1046528   ;;  %vm1285_vm8 = vsmask.f32 3328 }
   0x3   :  { %2107 = vmatprep.subr.bf16.mxu0 %v2391_v1  ;;  %2028 = vmatpush3.bf16.msra.mxu1 %v2311_v0  ;;  %v2317_v6 = vld [vmem:[%s2901_s2 + $0x38] sm:$0xff]   ;;  %v2319_v8 = vld [vmem:[%s2902_s0] sm:$0xff]   ;;  %v2320_v9 = vld [vmem:[%s2902_s0 + $0x8] sm:$0xff]   ;;  %vm1758_vm9 = vcmask 519168  }
   0x4   :  { %2108 = vmatpush3.bf16.msra.mxu0 %v2391_v1  ;;  %2029 = vmatprep.subr.bf16.mxu1 %v2313_v2  ;;  %v2418_v7 = vld [vmem:[%s2901_s2 + $0x98] sm:$0xff]   ;;  %v2321_v10 = vld [vmem:[%s2902_s0 + $0x10] sm:$0xff]   ;;  %97 = vst.msk [vmem:[#allocation2] sm:$0xff] %vm96_vm0, %v2319_v8  ;;  %98 = vst.msk [vmem:[#allocation2 + $0x8] sm:$0xff] %vm96_vm0, %v2320_v9 }
   0x5   :  { %2109 = vmatprep.subr.bf16.mxu0 %v2400_v3  ;;  %99 = vst.msk [vmem:[#allocation2 + $0x10] sm:$0xff] %vm96_vm0, %v2321_v10  ;;  %v2438_v11 = vld [vmem:[%s2901_s2] sm:$0xff]   ;;  %v2325_v13 = vld [vmem:[%s2902_s0 + $0x18] sm:$0xff]   ;;  %v2330_v40 = vld [vmem:[%s2902_s0 + $0x28] sm:$0xff]  }
   0x6   :  { %v2444_v12 = vld [vmem:[%s2901_s2 + $0xa0] sm:$0xff]   ;;  %100 = vst.msk [vmem:[#allocation2 + $0x18] sm:$0xff] %vm96_vm0, %v2325_v13  ;;  %v2331_v47 = vld [vmem:[%s2903_s1 + $0x30] sm:$0xff]   ;;  %v2324_v51 = vld [vmem:[%s2901_s2 + $0xa8] sm:$0xff]  }
   0x7   :  { %2030 = vmatpush3.bf16.msra.mxu1 %v2313_v2  ;;  %v2326_v14 = vld [vmem:[%s2902_s0 + $0x20] sm:$0xff]   ;;  %102 = vst.msk [vmem:[#allocation2 + $0x28] sm:$0xff] %vm96_vm0, %v2330_v40  ;;  %v2328_v57 = vld [vmem:[%s2901_s2 + $0x8] sm:$0xff]   ;;  %119 = vst.msk [vmem:[#allocation2 + $0x30] sm:$0xff] %vm96_vm0, %v2331_v47 }
   0x8   :  { %2110 = vmatpush3.bf16.msra.mxu0 %v2400_v3  ;;  %2031 = vmatprep.subr.bf16.mxu1 %v2315_v4  ;;  %101 = vst.msk [vmem:[#allocation2 + $0x20] sm:$0xff] %vm96_vm0, %v2326_v14  ;;  %v2327_v2 = vld [vmem:[%s2901_s2 + $0xb0] sm:$0xff]   ;;  %v2335_v40 = vld [vmem:[%s2901_s2 + $0xc8] sm:$0xff]   ;;  %v2346_v47 = vld [vmem:[%s2903_s1 + $0x38] sm:$0xff]  }
   0x9   :  { %2111 = vmatprep.subr.bf16.mxu0 %v2410_v5  ;;  %v2332_v9 = vld [vmem:[%s2901_s2 + $0x10] sm:$0xff]   ;;  %120 = vst.msk [vmem:[#allocation2 + $0x38] sm:$0xff] %vm96_vm0, %v2346_v47 }
   0xb   :  { %2032 = vmatpush3.bf16.msra.mxu1 %v2315_v4  ;;  %v2457_v15 = vld [vmem:[#allocation2] sm:$0xff]  ;;  %v2459_v16 = vld [vmem:[#allocation2 + $0x8] sm:$0xff] }
   0xc   :  { %2112 = vmatpush3.bf16.msra.mxu0 %v2410_v5  ;;  %2033 = vmatprep.subr.bf16.mxu1 %v2317_v6  ;;  %v2461_v17 = vld [vmem:[#allocation2] sm:$0xc0]  ;;  %v146_v18 = vshrl.u32 %v2457_v15, 16  ;;  %v148_v19 = vshll.u32 %v2457_v15, 16  ;;  %v153_v20 = vshll.u32 %v2459_v16, 16  ;;  %v157_v21 = vshrl.u32 %v2459_v16, 16 }
   0xd   :  { %2113 = vmatprep.subr.bf16.mxu0 %v2418_v7  ;;  %v2467_v22 = vld [vmem:[#allocation2 + $0x10] sm:$0xff]  ;;  %v774_v23 = vshrl.u32 %v2461_v17, 16  ;;  %v777_v24 = vshll.u32 %v2461_v17, 16  ;;  %v2480_v39 = vld [vmem:[#allocation2 + $0x18] sm:$0xff]  ;;  %v945_v46 = vld [vmem:[#allocation2] sm:$0x80] }
   0xe   :  { %v2472_v25 = vshll.u32 %v2467_v22, 16  ;;  %v2475_v26 = vshrl.u32 %v2467_v22, 16  ;;  %v150_v27 = vrot.slane %v148_v19, 1  ;;  %v155_v28 = vrot.slane %v153_v20, 1  ;;  %v2542_v13 = vld [vmem:[#allocation2 + $0x28] sm:$0xff] }
   0xf   :  { %2034 = vmatpush3.bf16.msra.mxu1 %v2317_v6  ;;  %v781_v29 = vrot.slane %v157_v21, 6  ;;  %v782_v30 = vrot.slane %v153_v20, 7  ;;  %v776_v31 = vrot.slane %v774_v23, 6  ;;  %v779_v32 = vrot.slane %v777_v24, 7  ;;  %v2492_v45 = vld [vmem:[#allocation2 + $0x20] sm:$0xff]  ;;  %v2329_v23 = vld [vmem:[%s2901_s2 + $0xb8] sm:$0xff]  }
  0x10   :  { %2114 = vmatpush3.bf16.msra.mxu0 %v2418_v7  ;;  %2047 = vmatprep.subr.bf16.mxu1 %v2438_v11  ;;  %v163_v33 = vrot.slane %v2472_v25, 1  ;;  %v785_v34 = vrot.slane %v2475_v26, 6  ;;  %v151_v35 = vor.u32 %v150_v27, %v146_v18  ;;  %v159_v36 = vor.u32 %v157_v21, %v155_v28  ;;  %v2550_v20 = vld [vmem:[#allocation2 + $0x30] sm:$0x1] }
  0x11   :  { %2127 = vmatprep.subr.bf16.mxu0 %v2444_v12  ;;  %v783_v37 = vor.u32 %v782_v30, %v781_v29  ;;  %v786_v38 = vrot.slane %v2472_v25, 7  ;;  %v780_v41 = vor.u32 %v779_v32, %v776_v31  ;;  %v2487_v43 = vshll.u32 %v2480_v39, 16  ;;  %v2334_v29 = vld [vmem:[%s2901_s2 + $0x18] sm:$0xff]  }
  0x12   :  { %v167_v42 = vor.u32 %v2475_v26, %v163_v33  ;;  %v2490_v44 = vshrl.u32 %v2480_v39, 16  ;;  %v156_v48 = vsel %vm144_vm1, %v151_v35, %v155_v28  ;;  %v164_v49 = vsel %vm144_vm1, %v159_v36, %v163_v33  ;;  %v2333_v35 = vld [vmem:[%s2901_s2 + $0xc0] sm:$0xff]  }
  0x13   :  { %v787_v50 = vor.u32 %v786_v38, %v785_v34  ;;  %v2503_v52 = vshll.u32 %v2492_v45, 16  ;;  %2035 = vmatprep.mubr.msk.bf16.mxu1 %vm96_vm0, %v156_v48  ;;  %v784_v53 = vsel %vm772_vm2, %v780_v41, %v783_v37  ;;  %v171_v54 = vrot.slane %v2487_v43, 1  ;;  %v2336_v34 = vld [vmem:[%s2901_s2 + $0x40] sm:$0xff]  }
  0x14   :  { %v789_v55 = vrot.slane %v2490_v44, 6  ;;  %v790_v56 = vrot.slane %v2487_v43, 7  ;;  %2115 = vmatprep.mubr.msk.bf16.mxu0 %vm96_vm0, %v784_v53  ;;  %2036 = vmatmul.mubr.msk.bf16.vlgmr.msra.gmra.mrb[0].mxu1 %vm96_vm0, %v164_v49  ;;  %v2519_v59 = vshrl.u32 %v2492_v45, 16  ;;  %v957_v6 = vrot.slane %v945_v46, 7  ;;  %v2337_v46 = vld [vmem:[%s2901_s2 + $0xd0] sm:$0xff]  }
  0x15   :  { %v788_v58 = vsel %vm772_vm2, %v783_v37, %v787_v50  ;;  %v794_v60 = vrot.slane %v2503_v52, 7  ;;  %2048 = vmatpush3.bf16.msra.mxu1 %v2438_v11  ;;  %v172_v61 = vsel %vm144_vm1, %v167_v42, %v171_v54  ;;  %v175_v63 = vor.u32 %v2490_v44, %v171_v54  ;;  %v763_v49 = vld [vmem:[#allocation2 + $0x30] sm:$0x7f]  ;;  %v2605_v53 = vld [vmem:[#allocation2 + $0x8] sm:$0xf0] }
  0x16   :  { %2116 = vmatmul.mubr.msk.bf16.vlgmr.msra.gmra.mrb[0].mxu0 %vm96_vm0, %v788_v58  ;;  %v791_v62 = vor.u32 %v790_v56, %v789_v55  ;;  %v179_v0 = vrot.slane %v2503_v52, 1  ;;  %2039 = vmatprep.mubr.msk.bf16.mxu1 %vm96_vm0, %v172_v61  ;;  %v793_v4 = vrot.slane %v2519_v59, 6  ;;  %v958_v8 = vrot.slane %v2459_v16, 7  ;;  %v2340_v61 = vld [vmem:[%s2901_s2 + $0x50] sm:$0xff]  }
  0x17   :  { %2128 = vmatpush3.bf16.msra.mxu0 %v2444_v12  ;;  %2049 = vmatprep.subr.bf16.mxu1 %v2328_v57  ;;  %v2548_v19 = vshll.u32 %v2542_v13, 16  ;;  %v2553_v21 = vshrl.u32 %v2542_v13, 16  ;;  %v193_v27 = vshll.u32 %v2550_v20, 16  ;;  %v960_v33 = vrot.slane %v2467_v22, 7 }
  0x18   :  { %2129 = vmatprep.subr.bf16.mxu0 %v2324_v51  ;;  %v792_v10 = vsel %vm772_vm2, %v787_v50, %v791_v62  ;;  %v2539_v11 = vor.u32 %v794_v60, %v793_v4  ;;  %v180_v12 = vsel %vm144_vm1, %v175_v63, %v179_v0  ;;  %v183_v18 = vor.u32 %v2519_v59, %v179_v0  ;;  %v2338_v50 = vld [vmem:[%s2901_s2 + $0x48] sm:$0xff]   ;;  %v2341_v0 = vld [vmem:[%s2901_s2 + $0xe0] sm:$0xff]  }
  0x19   :  { %2119 = vmatprep.mubr.msk.bf16.mxu0 %vm96_vm0, %v792_v10  ;;  %2050 = vmatpush3.bf16.msra.mxu1 %v2328_v57  ;;  %v959_v24 = vsel %vm956_vm3, %v957_v6, %v958_v8  ;;  %v187_v28 = vrot.slane %v2548_v19, 1  ;;  %v195_v30 = vrot.slane %v193_v27, 1  ;;  %v962_v36 = vrot.slane %v2480_v39, 7 }
  0x1a   :  { %v796_v14 = vsel %vm772_vm2, %v791_v62, %v2539_v11  ;;  %2051 = vmatprep.subr.bf16.mxu1 %v2332_v9  ;;  %v961_v38 = vsel %vm956_vm3, %v958_v8, %v960_v33  ;;  %v964_v42 = vrot.slane %v2492_v45, 7  ;;  %v966_v48 = vrot.slane %v2542_v13, 7 }
  0x1b   :  { %2130 = vmatpush3.bf16.msra.mxu0 %v2324_v51  ;;  %v188_v31 = vsel %vm144_vm1, %v183_v18, %v187_v28  ;;  %v191_v32 = vor.u32 %v2553_v21, %v187_v28  ;;  %v963_v41 = vsel %vm956_vm3, %v960_v33, %v962_v36  ;;  %v2339_v51 = vld [vmem:[%s2901_s2 + $0xd8] sm:$0xff]   ;;  %v802_v55 = vshrl.u32 %v763_v49, 16 }
  0x1c   :  { %2131 = vmatprep.subr.bf16.mxu0 %v2327_v2  ;;  %2040 = vmatmul.mubr.msk.bf16.gmra.mrb[4].mxu1 %vm96_vm0, %v180_v12  ;;  %v967_v54 = vsel %vm956_vm3, %v964_v42, %v966_v48  ;;  %v615_v56 = vrot.slane %v2461_v17, 6  ;;  %v616_v57 = vrot.slane %v2459_v16, 6  ;;  %v805_v58 = vshll.u32 %v763_v49, 16 }
  0x1d   :  { %2052 = vmatpush3.bf16.msra.mxu1 %v2332_v9  ;;  %2043 = vmatprep.mubr.msk.bf16.mxu1 %vm96_vm0, %v188_v31  ;;  %v196_v37 = vsel %vm144_vm1, %v191_v32, %v195_v30  ;;  %v968_v60 = vrot.slane %v763_v49, 7  ;;  %v618_v62 = vrot.slane %v2467_v22, 6  ;;  %v1128_v63 = vrot.slane %v2605_v53, 4 }
  0x1e   :  { %2120 = vmatmul.mubr.msk.bf16.gmra.mrb[4].mxu0 %vm96_vm0, %v796_v14  ;;  %2053 = vmatprep.subr.bf16.mxu1 %v2334_v29  ;;  %v1129_v17 = vrot.slane %v2467_v22, 4  ;;  %v620_v4 = vrot.slane %v2480_v39, 6  ;;  %v622_v9 = vrot.slane %v2492_v45, 6  ;;  %v804_v12 = vrot.slane %v802_v55, 6 }
  0x1f   :  { %2132 = vmatpush3.bf16.msra.mxu0 %v2327_v2  ;;  %2135 = vmatprep.mubr.msk.bf16.mxu0 %vm96_vm0, %v959_v24  ;;  %v2626_v2 = vsel %vm614_vm4, %v615_v56, %v616_v57  ;;  %v2630_v6 = vsel %vm614_vm4, %v616_v57, %v618_v62  ;;  %v969_v10 = vsel %vm956_vm3, %v966_v48, %v968_v60  ;;  %v807_v14 = vrot.slane %v805_v58, 7  ;;  %v437_v24 = vld [vmem:[#allocation2] sm:$0xfe]  ;;  %v2699_v57 = vld [vmem:[#allocation2 + $0x30] sm:$0xff] }
  0x20   :  { %2133 = vmatprep.subr.bf16.mxu0 %v2329_v23  ;;  %v2633_v8 = vsel %vm614_vm4, %v618_v62, %v620_v4  ;;  %v1130_v18 = vsel %vm1127_vm5, %v1128_v63, %v1129_v17  ;;  %v2642_v27 = vsel %vm614_vm4, %v620_v4, %v622_v9  ;;  %v624_v28 = vrot.slane %v2542_v13, 6 }
  0x21   :  { %2054 = vmatpush3.bf16.msra.mxu1 %v2334_v29  ;;  %v1496_v29 = vrot.slane %v2467_v22, 5  ;;  %v1131_v30 = vrot.slane %v2480_v39, 4  ;;  %v455_v31 = vrot.slane %v2459_v16, 1  ;;  %v1498_v32 = vrot.slane %v2480_v39, 5 }
  0x22   :  { %2067 = vmatprep.subr.bf16.mxu1 %v2336_v34  ;;  %v454_v33 = vrot.slane %v437_v24, 1  ;;  %v798_v47 = vrot.slane %v2548_v19, 7  ;;  %v457_v56 = vrot.slane %v2467_v22, 1  ;;  %v1135_v58 = vrot.slane %v2542_v13, 4 }
  0x23   :  { %2134 = vmatpush3.bf16.msra.mxu0 %v2329_v23  ;;  %v2342_v23 = vld [vmem:[%s2901_s2 + $0x58] sm:$0xff]   ;;  %v1132_v48 = vsel %vm1127_vm5, %v1129_v17, %v1131_v30  ;;  %v459_v60 = vrot.slane %v2480_v39, 1  ;;  %v1290_v62 = vshll.u32 %v2605_v53, 16  ;;  %v1137_v63 = vrot.slane %v2699_v57, 4 }
  0x24   :  { %2147 = vmatprep.subr.bf16.mxu0 %v2333_v35  ;;  %2044 = vmatmul.mubr.msk.bf16.gmra.mrb[8].mxu1 %vm96_vm0, %v196_v37  ;;  %v1133_v37 = vrot.slane %v2492_v45, 4  ;;  %v456_v49 = vsel %vm453_vm7, %v454_v33, %v455_v31  ;;  %v458_v17 = vsel %vm453_vm7, %v455_v31, %v457_v56  ;;  %v461_v24 = vrot.slane %v2492_v45, 1  ;;  %v2350_v33 = vld [vmem:[%s2901_s2 + $0x100] sm:$0xff]  }
  0x25   :  { %2055 = vmatprep.mubr.msk.bf16.mxu1 %vm96_vm0, %v2457_v15  ;;  %v965_v15 = vsel %vm956_vm3, %v962_v36, %v964_v42  ;;  %v1502_v36 = vrot.slane %v2542_v13, 5  ;;  %v460_v4 = vsel %vm453_vm7, %v457_v56, %v459_v60  ;;  %v1324_v56 = vrot.slane %v2553_v21, 4 }
  0x26   :  { %2136 = vmatmul.mubr.msk.bf16.vlgmr.msra.gmra.mrb[0].mxu0 %vm96_vm0, %v961_v38  ;;  %v2669_v38 = vsel %vm1494_vm6, %v1496_v29, %v1498_v32 }
  0x27   :  { %2148 = vmatpush3.bf16.msra.mxu0 %v2333_v35  ;;  %2139 = vmatprep.mubr.msk.bf16.mxu0 %vm96_vm0, %v963_v41  ;;  %v1500_v35 = vrot.slane %v2492_v45, 5 }
  0x28   :  { %2149 = vmatprep.subr.bf16.mxu0 %v2335_v40 }
  0x29   :  { %v2672_v41 = vsel %vm1494_vm6, %v1498_v32, %v1500_v35  ;;  %v2677_v42 = vsel %vm1494_vm6, %v1500_v35, %v1502_v36 }
  0x2b   :  { %2150 = vmatpush3.bf16.msra.mxu0 %v2335_v40  ;;  %v808_v40 = vor.u32 %v807_v14, %v804_v12  ;;  %v1292_v12 = vrot.slane %v1290_v62, 5  ;;  %v1297_v14 = vrot.slane %v2475_v26, 4  ;;  %v463_v26 = vrot.slane %v2542_v13, 1 }
  0x2c   :  { %2151 = vmatprep.subr.bf16.mxu0 %v2337_v46  ;;  %2056 = vmatmul.mubr.msk.bf16.vlgmr.msra.gmra.mrb[0].mxu1 %vm96_vm0, %v2459_v16  ;;  %v2344_v16 = vld [vmem:[%s2901_s2 + $0x60] sm:$0xff]  }
  0x2d   :  { %2068 = vmatpush3.bf16.msra.mxu1 %v2336_v34  ;;  %2059 = vmatprep.mubr.msk.bf16.mxu1 %vm96_vm0, %v2467_v22  ;;  %v2658_v34 = vsel %vm614_vm4, %v622_v9, %v624_v28  ;;  %v1111_v9 = vld [vmem:[#allocation2 + $0x38] sm:$0xf] }
  0x2e   :  { %2140 = vmatmul.mubr.msk.bf16.gmra.mrb[4].mxu0 %vm96_vm0, %v965_v15  ;;  %2069 = vmatprep.subr.bf16.mxu1 %v2338_v50 }
  0x2f   :  { %2152 = vmatpush3.bf16.msra.mxu0 %v2337_v46  ;;  %2143 = vmatprep.mubr.msk.bf16.mxu0 %vm96_vm0, %v967_v54  ;;  %v797_v46 = vrot.slane %v2553_v21, 6 }
  0x30   :  { %2153 = vmatprep.subr.bf16.mxu0 %v2339_v51 }
  0x31   :  { %2070 = vmatpush3.bf16.msra.mxu1 %v2338_v50  ;;  %v799_v15 = vor.u32 %v798_v47, %v797_v46  ;;  %v2343_v50 = vld [vmem:[%s2901_s2 + $0xe8] sm:$0xff]   ;;  %v2351_v47 = vld [vmem:[%s2901_s2 + $0x78] sm:$0xff]  }
  0x32   :  { %2071 = vmatprep.subr.bf16.mxu1 %v2340_v61 }
  0x33   :  { %2154 = vmatpush3.bf16.msra.mxu0 %v2339_v51  ;;  %v1134_v51 = vsel %vm1127_vm5, %v1131_v30, %v1133_v37  ;;  %v2691_v54 = vsel %vm772_vm2, %v2539_v11, %v799_v15  ;;  %v2694_v55 = vsel %vm772_vm2, %v799_v15, %v808_v40  ;;  %v2345_v11 = vld [vmem:[%s2901_s2 + $0xf0] sm:$0xff]   ;;  %v1139_v30 = vrot.slane %v1111_v9, 4 }
  0x34   :  { %2167 = vmatprep.subr.bf16.mxu0 %v2341_v0  ;;  %2060 = vmatmul.mubr.msk.bf16.gmra.mrb[4].mxu1 %vm96_vm0, %v2480_v39  ;;  %v2347_v39 = vld [vmem:[%s2901_s2 + $0x68] sm:$0xff]   ;;  %v1309_v40 = vrot.slane %v2487_v43, 5 }
  0x35   :  { %2063 = vmatprep.mubr.msk.bf16.mxu1 %vm96_vm0, %v2492_v45  ;;  %2072 = vmatpush3.bf16.msra.mxu1 %v2340_v61  ;;  %v1287_v61 = vshrl.u32 %v2605_v53, 16  ;;  %v1300_v53 = vrot.slane %v2472_v25, 5  ;;  %v2349_v25 = vld [vmem:[%s2901_s2 + $0x70] sm:$0xff]   ;;  %v462_v45 = vsel %vm453_vm7, %v459_v60, %v461_v24  ;;  %v1140_v35 = vsel %vm1127_vm5, %v1137_v63, %v1139_v30 }
  0x36   :  { %2144 = vmatmul.mubr.msk.bf16.gmra.mrb[8].mxu0 %vm96_vm0, %v969_v10  ;;  %2073 = vmatprep.subr.bf16.mxu1 %v2342_v23 }
  0x37   :  { %2155 = vmatprep.mubr.msk.bf16.mxu0 %vm96_vm0, %v1130_v18  ;;  %v1289_v10 = vrot.slane %v1287_v61, 4  ;;  %v1138_v18 = vsel %vm1127_vm5, %v1135_v58, %v1137_v63  ;;  %v1301_v32 = vor.u32 %v1300_v53, %v1297_v14 }
  0x39   :  { %2074 = vmatpush3.bf16.msra.mxu1 %v2342_v23  ;;  %v2348_v23 = vld [vmem:[%s2901_s2 + $0xf8] sm:$0xff]   ;;  %v1293_v31 = vor.u32 %v1292_v12, %v1289_v10  ;;  %v1483_v12 = vld [vmem:[#allocation2 + $0x8] sm:$0xe0] }
  0x3a   :  { %2087 = vmatprep.subr.bf16.mxu1 %v2344_v16  ;;  %v1495_v53 = vrot.slane %v1483_v12, 5 }
  0x3b   :  { %v1302_v46 = vsel %vm1285_vm8, %v1293_v31, %v1301_v32 }
  0x3c   :  { %2064 = vmatmul.mubr.msk.bf16.gmra.mrb[8].mxu1 %vm96_vm0, %v2542_v13 }
  0x3d   :  { %2075 = vmatprep.mubr.msk.bf16.mxu1 %vm96_vm0, %v456_v49  ;;  %v1318_v49 = vrot.slane %v2503_v52, 5 }
  0x3e   :  { %2156 = vmatmul.mubr.msk.bf16.vlgmr.msra.gmra.mrb[0].mxu0 %vm96_vm0, %v1132_v48  ;;  %v1315_v48 = vrot.slane %v2519_v59, 4  ;;  %v1334_v59 = vshll.u32 %v2699_v57, 16 }
  0x3f   :  { %2168 = vmatpush3.bf16.msra.mxu0 %v2341_v0  ;;  %2159 = vmatprep.mubr.msk.bf16.mxu0 %vm96_vm0, %v1134_v51  ;;  %v1136_v0 = vsel %vm1127_vm5, %v1133_v37, %v1135_v58  ;;  %v464_v37 = vsel %vm453_vm7, %v461_v24, %v463_v26  ;;  %v1327_v58 = vrot.slane %v2548_v19, 5 }
  0x40   :  { %2169 = vmatprep.subr.bf16.mxu0 %v2343_v50  ;;  %v1319_v15 = vor.u32 %v1318_v49, %v1315_v48  ;;  %v1336_v62 = vrot.slane %v1334_v59, 5  ;;  %v1933_v59 = vld [vmem:[%s2904_s4 + $0x10] sm:$0xff]  }
  0x41   :  { %v1328_v19 = vor.u32 %v1327_v58, %v1324_v56 }
  0x43   :  { %2170 = vmatpush3.bf16.msra.mxu0 %v2343_v50  ;;  %v1331_v50 = vshrl.u32 %v2699_v57, 16 }
  0x44   :  { %2171 = vmatprep.subr.bf16.mxu0 %v2345_v11  ;;  %2076 = vmatmul.mubr.msk.bf16.vlgmr.msra.gmra.mrb[0].mxu1 %vm96_vm0, %v458_v17  ;;  %v2353_v17 = vld [vmem:[%s2901_s2 + $0x110] sm:$0xff]  }
  0x45   :  { %2088 = vmatpush3.bf16.msra.mxu1 %v2344_v16  ;;  %2079 = vmatprep.mubr.msk.bf16.mxu1 %vm96_vm0, %v460_v4  ;;  %v1306_v16 = vrot.slane %v2490_v44, 4  ;;  %v465_v44 = vrot.slane %v2550_v20, 1  ;;  %v2352_v20 = vld [vmem:[%s2901_s2 + $0x108] sm:$0xff]   ;;  %v1333_v61 = vrot.slane %v1331_v50, 4  ;;  %v1329_v4 = vsel %vm1285_vm8, %v1319_v15, %v1328_v19 }
  0x46   :  { %2160 = vmatmul.mubr.msk.bf16.gmra.mrb[4].mxu0 %vm96_vm0, %v1136_v0  ;;  %2089 = vmatprep.subr.bf16.mxu1 %v2347_v39 }
  0x47   :  { %2172 = vmatpush3.bf16.msra.mxu0 %v2345_v11  ;;  %2163 = vmatprep.mubr.msk.bf16.mxu0 %vm96_vm0, %v1138_v18  ;;  %v1310_v43 = vor.u32 %v1309_v40, %v1306_v16  ;;  %v466_v52 = vsel %vm453_vm7, %v463_v26, %v465_v44  ;;  %v1276_v11 = vld [vmem:[#allocation2 + $0x38] sm:$0x1f]  ;;  %v1337_v0 = vor.u32 %v1336_v62, %v1333_v61  ;;  %v603_v18 = vld [vmem:[#allocation2 + $0x30] sm:$0x3f] }
  0x48   :  { %2173 = vmatprep.subr.bf16.mxu0 %v2348_v23  ;;  %v1340_v21 = vshrl.u32 %v1276_v11, 16  ;;  %v1343_v63 = vshll.u32 %v1276_v11, 16 }
  0x49   :  { %2090 = vmatpush3.bf16.msra.mxu1 %v2347_v39  ;;  %v1311_v51 = vsel %vm1285_vm8, %v1301_v32, %v1310_v43  ;;  %v1320_v60 = vsel %vm1285_vm8, %v1310_v43, %v1319_v15  ;;  %v1338_v10 = vsel %vm1285_vm8, %v1328_v19, %v1337_v0  ;;  %v1934_v43 = vld [vmem:[%s2904_s4 + $0x18] sm:$0xff]  }
  0x4a   :  { %2091 = vmatprep.subr.bf16.mxu1 %v2349_v25  ;;  %v1342_v39 = vrot.slane %v1340_v21, 4  ;;  %v1345_v9 = vrot.slane %v1343_v63, 5  ;;  %v1918_v63 = vunpack.c.l.bf16 %v1933_v59 }
  0x4b   :  { %2174 = vmatpush3.bf16.msra.mxu0 %v2348_v23  ;;  %v2827_v23 = vld [vmem:[%s2905_s3] ss:$0 sm:$0xff] }
  0x4c   :  { %2187 = vmatprep.subr.bf16.mxu0 %v2350_v33  ;;  %2080 = vmatmul.mubr.msk.bf16.gmra.mrb[4].mxu1 %vm96_vm0, %v462_v45  ;;  %v1346_v14 = vor.u32 %v1345_v9, %v1342_v39  ;;  %v1923_v9 = vunpack.c.h.bf16 %v1934_v43 }
  0x4d   :  { %2083 = vmatprep.mubr.msk.bf16.mxu1 %vm96_vm0, %v464_v37  ;;  %2092 = vmatpush3.bf16.msra.mxu1 %v2349_v25 }
  0x4e   :  { %2164 = vmatmul.mubr.msk.bf16.gmra.mrb[8].mxu0 %vm96_vm0, %v1140_v35  ;;  %2093 = vmatprep.subr.bf16.mxu1 %v2351_v47 }
  0x4f   :  { %2175 = vmatprep.mubr.msk.bf16.mxu0 %vm96_vm0, %v1302_v46 }
  0x51   :  { %2094 = vmatpush3.bf16.msra.mxu1 %v2351_v47 }
  0x52   :  { %2207 = vmatprep.subr.bf16.mxu1 %v2391_v1 }
  0x54   :  { %2084 = vmatmul.mubr.msk.bf16.gmra.mrb[8].mxu1 %vm96_vm0, %v466_v52 }
  0x55   :  { %2095 = vmatprep.mubr.msk.bf16.mxu1 %vm96_vm0, %v2626_v2  ;;  %v2354_v2 = vld [vmem:[%s2901_s2 + $0x118] sm:$0xff]  }
  0x56   :  { %2176 = vmatmul.mubr.msk.bf16.vlgmr.msra.gmra.mrb[0].mxu0 %vm96_vm0, %v1311_v51 }
  0x57   :  { %2188 = vmatpush3.bf16.msra.mxu0 %v2350_v33  ;;  %2179 = vmatprep.mubr.msk.bf16.mxu0 %vm96_vm0, %v1320_v60 }
  0x58   :  { %2189 = vmatprep.subr.bf16.mxu0 %v2352_v20 }
  0x5b   :  { %2190 = vmatpush3.bf16.msra.mxu0 %v2352_v20 }
  0x5c   :  { %2191 = vmatprep.subr.bf16.mxu0 %v2353_v17  ;;  %2096 = vmatmul.mubr.msk.bf16.vlgmr.msra.gmra.mrb[0].mxu1 %vm96_vm0, %v2630_v6  ;;  %v1347_v6 = vsel %vm1285_vm8, %v1337_v0, %v1346_v14 }
  0x5d   :  { %2211 = vmatpush3.bf16.msra.mxu1 %v2391_v1  ;;  %2099 = vmatprep.mubr.msk.bf16.mxu1 %vm96_vm0, %v2633_v8  ;;  %v1497_v1 = vsel %vm1494_vm6, %v1495_v53, %v1496_v29  ;;  %v626_v8 = vrot.slane %v603_v18, 6 }
  0x5e   :  { %2180 = vmatmul.mubr.msk.bf16.gmra.mrb[4].mxu0 %vm96_vm0, %v1329_v4  ;;  %2208 = vmatprep.subr.bf16.mxu1 %v2400_v3 }
  0x5f   :  { %2192 = vmatpush3.bf16.msra.mxu0 %v2353_v17  ;;  %2183 = vmatprep.mubr.msk.bf16.mxu0 %vm96_vm0, %v1338_v10 }
  0x60   :  { %2193 = vmatprep.subr.bf16.mxu0 %v2354_v2 }
  0x61   :  { %2212 = vmatpush3.bf16.msra.mxu1 %v2400_v3  ;;  %v627_v3 = vsel %vm614_vm4, %v624_v28, %v626_v8 }
  0x62   :  { %2209 = vmatprep.subr.bf16.mxu1 %v2410_v5 }
  0x63   :  { %2194 = vmatpush3.bf16.msra.mxu0 %v2354_v2 }
  0x64   :  { %2100 = vmatmul.mubr.msk.bf16.gmra.mrb[4].mxu1 %vm96_vm0, %v2642_v27 }
  0x65   :  { %2103 = vmatprep.mubr.msk.bf16.mxu1 %vm96_vm0, %v2658_v34  ;;  %2213 = vmatpush3.bf16.msra.mxu1 %v2410_v5  ;;  %v1504_v5 = vrot.slane %v2699_v57, 5 }
  0x66   :  { %2184 = vmatmul.mubr.msk.bf16.gmra.mrb[8].mxu0 %vm96_vm0, %v1347_v6  ;;  %2210 = vmatprep.subr.bf16.mxu1 %v2418_v7  ;;  %v1919_v6 = vunpack.c.h.bf16 %v1933_v59 }
  0x67   :  { %2195 = vmatprep.mubr.msk.bf16.mxu0 %vm96_vm0, %v1497_v1  ;;  %v1505_v22 = vsel %vm1494_vm6, %v1502_v36, %v1504_v5 }
  0x69   :  { %2214 = vmatpush3.bf16.msra.mxu1 %v2418_v7  ;;  %v1506_v7 = vrot.slane %v1276_v11, 5  ;;  %v1922_v11 = vunpack.c.l.bf16 %v1934_v43 }
  0x6b   :  { %v1507_v27 = vsel %vm1494_vm6, %v1504_v5, %v1506_v7 }
  0x6c   :  { %2104 = vmatmul.mubr.msk.bf16.gmra.mrb[8].mxu1 %vm96_vm0, %v627_v3 }
  0x6d   :  { %2123 = vmatprep.mubr.msk.bf16.mxu1 %vm96_vm0, %v2691_v54 }
  0x6e   :  { %2196 = vmatmul.mubr.msk.bf16.vlgmr.msra.gmra.mrb[0].mxu0 %vm96_vm0, %v2669_v38 }
  0x6f   :  { %2199 = vmatprep.mubr.msk.bf16.mxu0 %vm96_vm0, %v2672_v41 }
  0x76   :  { %2200 = vmatmul.mubr.msk.bf16.gmra.mrb[4].mxu0 %vm96_vm0, %v2677_v42  ;;  %v1932_v42 = vld [vmem:[%s2904_s4 + $0x8] sm:$0xff]  }
  0x77   :  { %2203 = vmatprep.mubr.msk.bf16.mxu0 %vm96_vm0, %v1505_v22  ;;  %v1914_v30 = vunpack.c.l.bf16 %v1932_v42  ;;  %v1915_v35 = vunpack.c.h.bf16 %v1932_v42 }
  0x78   :  { %2124 = vmatmul.mubr.msk.bf16.vlgmr.msra.gmra.mrb[8].mxu1 %vm96_vm0, %v2694_v55  ;;  %v1909_v55 = vld [vmem:[%s2904_s4] sm:$0xff]  }
  0x79   :  { %v1910_v31 = vunpack.c.l.bf16 %v1909_v55  ;;  %v1911_v46 = vunpack.c.h.bf16 %v1909_v55 }
  0x7e   :  { %2204 = vmatmul.mubr.msk.bf16.gmra.mrb[8].mxu0 %vm96_vm0, %v1507_v27  ;;  %v1936_v27 = vld [vmem:[%s2904_s4 + $0x28] sm:$0xff]  }
  0x7f   :  { %v1930_v55 = vunpack.c.l.bf16 %v1936_v27 }
 0x12f   :  { %v2097_v28 = vpop.f32.mrb[0].mxu1 }
 0x130   :  { %v704_v29 = vpop.f32.mrb[1].mxu1 }
 0x131   :  { %v2098_v34 = vpop.f32.mrb[2].mxu1 }
 0x132   :  { %v707_v38 = vpop.f32.mrb[3].mxu1 }
 0x137   :  { %v2101_v13 = vpop.f32.mrb[4].mxu1 }
 0x138   :  { %v720_v41 = vpop.f32.mrb[5].mxu1 }
 0x139   :  { %v2102_v36 = vpop.f32.mrb[6].mxu1 }
 0x13a   :  { %v723_v54 = vpop.f32.mrb[7].mxu1 }
 0x141   :  { %v2197_v57 = vpop.f32.mrb[0].mxu0 }
 0x142   :  { %v2215_v24 = vadd.f32 %v2197_v57, %v2097_v28  ;;  %v1584_v26 = vpop.f32.mrb[1].mxu0 }
 0x143   :  { %v2216_v25 = vadd.f32 %v1584_v26, %v704_v29  ;;  %v2198_v32 = vpop.f32.mrb[2].mxu0 }
 0x144   :  { %v1652_v33 = vadd.f32 %v2215_v24, %v2827_v23  ;;  %v2217_v45 = vadd.f32 %v2198_v32, %v2098_v34  ;;  %v1587_v37 = vpop.f32.mrb[3].mxu0  ;;  %v1935_v34 = vld [vmem:[%s2904_s4 + $0x20] sm:$0xff]  }
 0x145   :  { %v1650_v16 = vadd.f32 %v2216_v25, %v2827_v23  ;;  %v2218_v40 = vadd.f32 %v1587_v37, %v707_v38  ;;  %v1926_v25 = vunpack.c.l.bf16 %v1935_v34 }
 0x146   :  { %v1688_v47 = vadd.f32 %v1914_v30, %v1652_v33  ;;  %v1653_v48 = vadd.f32 %v2217_v45, %v2827_v23 }
 0x147   :  { %v1686_v49 = vadd.f32 %v1910_v31, %v1650_v16  ;;  %v1651_v44 = vadd.f32 %v2218_v40, %v2827_v23 }
 0x148   :  { %v1700_v15 = vmax.f32 %v1688_v47, 0.0  ;;  %v1689_v50 = vadd.f32 %v1915_v35, %v1653_v48  ;;  %v1931_v35 = vunpack.c.h.bf16 %v1936_v27  ;;  %v1927_v47 = vunpack.c.h.bf16 %v1935_v34 }
 0x149   :  { %v1698_v52 = vmax.f32 %v1686_v49, 0.0  ;;  %v1687_v51 = vadd.f32 %v1911_v46, %v1651_v44  ;;  %v2201_v56 = vpop.f32.mrb[4].mxu0 }
 0x14a   :  { %v1898_v58 = vpack.c.bf16 %v1700_v15, %v1700_v15  ;;  %v1701_v20 = vmax.f32 %v1689_v50, 0.0  ;;  %v2219_v60 = vadd.f32 %v2201_v56, %v2101_v13  ;;  %v1600_v61 = vpop.f32.mrb[5].mxu0 }
 0x14b   :  { %v1896_v62 = vpack.c.bf16 %v1698_v52, %v1698_v52  ;;  %v1699_v19 = vmax.f32 %v1687_v51, 0.0  ;;  %v2220_v21 = vadd.f32 %v1600_v61, %v720_v41  ;;  %v2202_v17 = vpop.f32.mrb[6].mxu0  ;;  %v2125_v10 = vpop.f32.mrb[8].mxu1 }
 0x14c   :  { %1761 = vst.msk [vmem:[%s2906_s5 + $0x8] sm:$0xf] %vm1758_vm9, %v1898_v58  ;;  %v1899_v0 = vpack.c.bf16 %v1701_v20, %v1701_v20  ;;  %v1656_v4 = vadd.f32 %v2219_v60, %v2827_v23  ;;  %v2221_v39 = vadd.f32 %v2202_v17, %v2102_v36  ;;  %v1603_v2 = vpop.f32.mrb[7].mxu0  ;;  %v918_v18 = vpop.f32.mrb[9].mxu1 }
 0x14d   :  { %1759 = vst.msk [vmem:[%s2906_s5] sm:$0xf] %vm1758_vm9, %v1896_v62  ;;  %v1897_v12 = vpack.c.bf16 %v1699_v19, %v1699_v19  ;;  %v1654_v14 = vadd.f32 %v2220_v21, %v2827_v23  ;;  %v2222_v53 = vadd.f32 %v1603_v2, %v723_v54  ;;  %v2126_v3 = vpop.f32.mrb[10].mxu1 }
 0x14e   :  { %1762 = vst.msk [vmem:[%s2906_s5 + $0xc] sm:$0xf] %vm1758_vm9, %v1899_v0  ;;  %v1692_v1 = vadd.f32 %v1922_v11, %v1656_v4  ;;  %v1657_v8 = vadd.f32 %v2221_v39, %v2827_v23  ;;  %v921_v7 = vpop.f32.mrb[11].mxu1 }
 0x14f   :  { %1760 = vst.msk [vmem:[%s2906_s5 + $0x4] sm:$0xf] %vm1758_vm9, %v1897_v12  ;;  %v1690_v5 = vadd.f32 %v1918_v63, %v1654_v14  ;;  %v1655_v22 = vadd.f32 %v2222_v53, %v2827_v23 }
 0x150   :  { %v1704_v28 = vmax.f32 %v1692_v1, 0.0  ;;  %v1693_v29 = vadd.f32 %v1923_v9, %v1657_v8 }
 0x151   :  { %v1702_v38 = vmax.f32 %v1690_v5, 0.0  ;;  %v1691_v13 = vadd.f32 %v1919_v6, %v1655_v22  ;;  %v2205_v41 = vpop.f32.mrb[8].mxu0 }
 0x152   :  { %v1902_v36 = vpack.c.bf16 %v1704_v28, %v1704_v28  ;;  %v1705_v54 = vmax.f32 %v1693_v29, 0.0  ;;  %v2223_v42 = vadd.f32 %v2205_v41, %v2125_v10  ;;  %v1616_v57 = vpop.f32.mrb[9].mxu0 }
 0x153   :  { %v1900_v24 = vpack.c.bf16 %v1702_v38, %v1702_v38  ;;  %v1703_v30 = vmax.f32 %v1691_v13, 0.0  ;;  %v2224_v26 = vadd.f32 %v1616_v57, %v918_v18  ;;  %v2206_v31 = vpop.f32.mrb[10].mxu0 }
 0x154   :  { %1765 = vst.msk [vmem:[%s2906_s5 + $0x18] sm:$0xf] %vm1758_vm9, %v1902_v36  ;;  %v1903_v32 = vpack.c.bf16 %v1705_v54, %v1705_v54  ;;  %v1660_v33 = vadd.f32 %v2223_v42, %v2827_v23  ;;  %v2225_v45 = vadd.f32 %v2206_v31, %v2126_v3  ;;  %v1619_v37 = vpop.f32.mrb[11].mxu0 }
 0x155   :  { %1763 = vst.msk [vmem:[%s2906_s5 + $0x10] sm:$0xf] %vm1758_vm9, %v1900_v24  ;;  %v1901_v16 = vpack.c.bf16 %v1703_v30, %v1703_v30  ;;  %v1658_v40 = vadd.f32 %v2224_v26, %v2827_v23  ;;  %v2226_v46 = vadd.f32 %v1619_v37, %v921_v7 }
 0x156   :  { %1766 = vst.msk [vmem:[%s2906_s5 + $0x1c] sm:$0xf] %vm1758_vm9, %v1903_v32  ;;  %v1696_v48 = vadd.f32 %v1930_v55, %v1660_v33  ;;  %v1661_v49 = vadd.f32 %v2225_v45, %v2827_v23 }
 0x157   :  { %1764 = vst.msk [vmem:[%s2906_s5 + $0x14] sm:$0xf] %vm1758_vm9, %v1901_v16  ;;  %v1694_v44 = vadd.f32 %v1926_v25, %v1658_v40  ;;  %v1659_v43 = vadd.f32 %v2226_v46, %v2827_v23 }
 0x158   :  { %v1708_v15 = vmax.f32 %v1696_v48, 0.0  ;;  %v1697_v50 = vadd.f32 %v1931_v35, %v1661_v49 }
 0x159   :  { %v1706_v59 = vmax.f32 %v1694_v44, 0.0  ;;  %v1695_v52 = vadd.f32 %v1927_v47, %v1659_v43 }
 0x15a   :  { %v1906_v51 = vpack.c.bf16 %v1708_v15, %v1708_v15  ;;  %v1709_v56 = vmax.f32 %v1697_v50, 0.0 }
 0x15b   :  { %v1904_v58 = vpack.c.bf16 %v1706_v59, %v1706_v59  ;;  %v1707_v20 = vmax.f32 %v1695_v52, 0.0 }
 0x15c   :  { %1769 = vst.msk [vmem:[%s2906_s5 + $0x28] sm:$0xf] %vm1758_vm9, %v1906_v51  ;;  %v1907_v60 = vpack.c.bf16 %v1709_v56, %v1709_v56 }
 0x15d   :  { %1767 = vst.msk [vmem:[%s2906_s5 + $0x20] sm:$0xf] %vm1758_vm9, %v1904_v58  ;;  %v1905_v23 = vpack.c.bf16 %v1707_v20, %v1707_v20 }
 0x15e   :  { %1770 = vst.msk [vmem:[%s2906_s5 + $0x2c] sm:$0xf] %vm1758_vm9, %v1907_v60 }
 0x15f   :  { %1768 = vst.msk [vmem:[%s2906_s5 + $0x24] sm:$0xf] %vm1758_vm9, %v1905_v23 }

</bundles_post_ra>
